<compile_context>
chip_gen: v7x
topology: tpu7x:2x2x1
jax: 0.10.0
libtpu: 0.0.40
codegen_flags: <defaults>
</compile_context>

<pallas_src>
import jax
import jax.numpy as jnp
from jax.experimental import pallas as pl
from jax.experimental.pallas import tpu as pltpu


# ----------------------------------------------------------------------------
# Conversion-time glue: TernaryQuantizer.forward semantics
# ----------------------------------------------------------------------------
def ternary_quantize_weight(w):
    """scale = mean(|w|).clamp(min=1e-8); q = round(clamp(w/scale, -1, 1)) as int8."""
    scale = jnp.maximum(jnp.mean(jnp.abs(w)), 1e-8)
    q = jnp.round(jnp.clip(w / scale, -1.0, 1.0)).astype(jnp.int8)
    return q, scale


# ----------------------------------------------------------------------------
# Pallas kernel: one (tile_m x tile_n) output block of a BitLinear layer
# ----------------------------------------------------------------------------
def bitlinear_kernel(x_ref, w_ref, b_ref, ws_ref, o_ref, xq_ref, rs_ref):
    """
    x_ref : (tile_m, K)      f32   activation rows (full K: LayerNorm needs the row)
    w_ref : (K, tile_n)      bf16  ternary weight slice, values in {-1, 0, +1}
    b_ref : (1, tile_n)      f32   bias slice
    ws_ref: (1,)             f32   weight_scale / 127           (SMEM scalar)
    o_ref : (tile_m, tile_n) f32   output block
    xq_ref: (tile_m, K)      bf16  scratch: integer-valued quantized activations
    rs_ref: (tile_m, 1)      f32   scratch: per-row post-matmul scale
    """
    j = pl.program_id(1)

    # LayerNorm + activation fake-quant: once per M tile, reused over all N tiles.
    @pl.when(j == 0)
    def _():
        x = x_ref[...].astype(jnp.float32)
        mean = jnp.mean(x, axis=-1, keepdims=True)
        xc = x - mean
        var = jnp.mean(xc * xc, axis=-1, keepdims=True)
        x_norm = xc * jax.lax.rsqrt(var + 1e-5)

        absmax = jnp.maximum(jnp.max(jnp.abs(x_norm), axis=-1, keepdims=True), 1e-5)
        scale = 127.0 * pl.reciprocal(absmax, approx=False)      # per-row only
        x_int = jnp.round(jnp.clip(x_norm * scale, -127.0, 127.0))
        # x_int are integers in [-127,127] -> exact in bf16. The dequant (1/scale)
        # and the ternary weight scale are folded into a rank-1 post-matmul scale,
        # so no per-element divide and the MXU runs a pure bf16 x bf16 matmul.
        xq_ref[...] = x_int.astype(jnp.bfloat16)
        rs_ref[...] = absmax * ws_ref[0]          # = (absmax / 127) * weight_scale

    acc = jnp.dot(xq_ref[...], w_ref[...], preferred_element_type=jnp.float32)
    o_ref[...] = acc * rs_ref[...] + b_ref[...]


def _vmem_limit_bytes(tile_m, tile_n, K):
    # double-buffered input/output blocks + scratch, 2x headroom,
    # floor 8 MiB, capped at 48 MiB so it also fits v7x's 64 MiB physical VMEM.
    blocks = 2 * (tile_m * K * 4 + K * tile_n * 2 + tile_n * 4 + tile_m * tile_n * 4)
    scratch = tile_m * K * 2 + tile_m * 4
    return int(min(max(2 * (blocks + scratch), 8 * 1024 * 1024), 48 * 1024 * 1024))


# ----------------------------------------------------------------------------
# Wrapper: pads/tiles, pre-transposes the ternary weight, launches the kernel
# ----------------------------------------------------------------------------
def bitlinear_forward(x, w_q, w_scale, bias, *, tile_m=128, tile_n=128):
    """BitLinear layer. x: (..., K); w_q: (N, K) ternary int8; w_scale: scalar; bias: (N,)."""
    lead = x.shape[:-1]
    K = x.shape[-1]
    N = w_q.shape[0]

    x2 = x.reshape(-1, K).astype(jnp.float32)
    M = x2.shape[0]
    mt = int(pl.cdiv(M, tile_m))
    nt = int(pl.cdiv(N, tile_n))
    M_pad, N_pad = mt * tile_m, nt * tile_n

    if M_pad != M:
        x2 = jnp.pad(x2, ((0, M_pad - M), (0, 0)))
    # One-time pre-transpose to (K, N): no .T inside the kernel. Ship raw ternary
    # values in bf16 ({-1, 0, +1} are exact); pad N so output lanes are 128-dense.
    w_kn = jnp.pad(w_q.astype(jnp.bfloat16).T, ((0, 0), (0, N_pad - N)))
    b_row = jnp.pad(bias.astype(jnp.float32), (0, N_pad - N)).reshape(1, N_pad)
    ws = jnp.reshape(w_scale.astype(jnp.float32) / 127.0, (1,))

    out = pl.pallas_call(
        bitlinear_kernel,
        out_shape=jax.ShapeDtypeStruct((M_pad, N_pad), jnp.float32),
        grid_spec=pltpu.PrefetchScalarGridSpec(
            num_scalar_prefetch=0,
            grid=(mt, nt),                                          # i: M tiles, j: N tiles
            in_specs=[
                pl.BlockSpec((tile_m, K), lambda i, j: (i, 0)),     # x rows (full K)
                pl.BlockSpec((K, tile_n), lambda i, j: (0, j)),     # weight (K, tile_n)
                pl.BlockSpec((1, tile_n), lambda i, j: (0, j)),     # bias slice
                pl.BlockSpec(memory_space=pltpu.MemorySpace.SMEM),  # weight_scale/127
            ],
            out_specs=pl.BlockSpec((tile_m, tile_n), lambda i, j: (i, j)),
            scratch_shapes=[
                pltpu.VMEM((tile_m, K), jnp.bfloat16),   # quantized activations (reused over j)
                pltpu.VMEM((tile_m, 1), jnp.float32),    # per-row output scale
            ],
        ),
        compiler_params=pltpu.CompilerParams(
            dimension_semantics=("parallel", "arbitrary"),
            vmem_limit_bytes=_vmem_limit_bytes(tile_m, tile_n, K),
        ),
    )(x2, w_kn, b_row, ws)

    return out[:M, :N].reshape(*lead, N)


# ----------------------------------------------------------------------------
# BitNetModel: 2-layer MLP of nn.Linear converted to BitLinear (convert_to_bitnet)
# ----------------------------------------------------------------------------
class BitNetModelJAX:
    def __init__(self, key, in_features=32, hidden=32, out_features=32):
        k1, k2, k3, k4 = jax.random.split(key, 4)
        # Deterministic synthetic weights (stand-in for nn.Linear init)
        w1 = jax.random.normal(k1, (hidden, in_features), jnp.float32) * 0.1
        b1 = jax.random.normal(k2, (hidden,), jnp.float32) * 0.01
        w2 = jax.random.normal(k3, (out_features, hidden), jnp.float32) * 0.1
        b2 = jax.random.normal(k4, (out_features,), jnp.float32) * 0.01

        # quantize_weight() at conversion time (TernaryQuantizer.forward)
        self.w1_q, self.w1_scale = ternary_quantize_weight(w1)
        self.w2_q, self.w2_scale = ternary_quantize_weight(w2)
        self.b1, self.b2 = b1, b2
        # TODO(synk): TernaryQuantizer.backward (STE) is training-only; forward-only here.

    def __call__(self, x):
        h = bitlinear_forward(x, self.w1_q, self.w1_scale, self.b1)
        return bitlinear_forward(h, self.w2_q, self.w2_scale, self.b2)


# ----------------------------------------------------------------------------
# Pure-JAX reference (mirrors the PyTorch forward) for verification
# ----------------------------------------------------------------------------
def _ref_bitlinear(x, w_q, w_scale, bias):
    x = x.astype(jnp.float32)
    mean = jnp.mean(x, axis=-1, keepdims=True)
    var = jnp.mean((x - mean) ** 2, axis=-1, keepdims=True)
    x_norm = (x - mean) / jnp.sqrt(var + 1e-5)
    scale = 127.0 / jnp.maximum(jnp.max(jnp.abs(x_norm), axis=-1, keepdims=True), 1e-5)
    x_quant = jnp.round(jnp.clip(x_norm * scale, -127.0, 127.0)) / scale
    w_dequant = w_q.astype(jnp.float32) * w_scale
    return x_quant @ w_dequant.T + bias


if __name__ == "__main__":
    key = jax.random.PRNGKey(0)
    k_x, k_m = jax.random.split(key)

    # Small shapes: batch=2, seq=8, hidden=32
    x = jax.random.normal(k_x, (2, 8, 32), jnp.float32)
    model = BitNetModelJAX(k_m, in_features=32, hidden=32, out_features=32)

    out = jax.block_until_ready(model(x))
    assert out.shape == (2, 8, 32)

    ref = _ref_bitlinear(
        _ref_bitlinear(x, model.w1_q, model.w1_scale, model.b1),
        model.w2_q, model.w2_scale, model.b2)

    # Tolerance note: the activation fake-quant is discontinuous (255 levels).
    # Tiny float-associativity differences between the kernel's exact-integer
    # bf16 MXU path and the f32 reference can flip an element across a rounding
    # boundary, shifting that output by ~(absmax/127)*|w| ~ 2e-3; everything
    # else agrees to ~1e-5. Bound the end-to-end error accordingly.
    err = float(jnp.max(jnp.abs(out - ref)))
    assert err < 1e-2, f"mismatch vs reference: max |diff| = {err}"

    print("KERNEL_OK")
</pallas_src>

<mosaic_0001>
module attributes {stable_mosaic.version = 11 : i64} {
  func.func @bitlinear_kernel(%arg0: i32, %arg1: i32, %arg2: memref<128x32xf32, #tpu.memory_space<vmem>>, %arg3: memref<32x128xbf16, #tpu.memory_space<vmem>>, %arg4: memref<1x128xf32, #tpu.memory_space<vmem>>, %arg5: memref<1xf32, #tpu.memory_space<smem>>, %arg6: memref<128x128xf32, #tpu.memory_space<vmem>>, %arg7: memref<128x32xbf16, #tpu.memory_space<vmem>>, %arg8: memref<128x1xf32, #tpu.memory_space<vmem>>) attributes {dimension_semantics = [#tpu.dimension_semantics<parallel>, #tpu.dimension_semantics<arbitrary>], iteration_bounds = array<i64: 1, 1>, scalar_prefetch = 0 : i64, scratch_operands = 2 : i64, tpu.core_type = #tpu.core_type<tc>, window_params = [{transform_indices = @transform_0, window_bounds = array<i64: 128, 32>}, {transform_indices = @transform_1, window_bounds = array<i64: 32, 128>}, {transform_indices = @transform_2, window_bounds = array<i64: 1, 128>}, {transform_indices = @transform_3, window_bounds = array<i64: 1>}, {transform_indices = @transform_4, window_bounds = array<i64: 128, 128>}]} {
    %c0_i32 = arith.constant 0 : i32
    %0 = arith.cmpi eq, %arg1, %c0_i32 : i32
    %1 = arith.extui %0 : i1 to i32
    %c0_i32_0 = arith.constant 0 : i32
    %2 = arith.cmpi ne, %1, %c0_i32_0 : i32
    scf.if %2 {
      %c0_10 = arith.constant 0 : index
      %c0_11 = arith.constant 0 : index
      %13 = vector.load %arg2[%c0_10, %c0_11] : memref<128x32xf32, #tpu.memory_space<vmem>>, vector<128x32xf32>
      %cst_12 = arith.constant dense<0.000000e+00> : vector<128xf32>
      %14 = vector.multi_reduction <add>, %13, %cst_12 [1] : vector<128x32xf32> to vector<128xf32>
      %15 = vector.shape_cast %14 : vector<128xf32> to vector<128x1xf32>
      %cst_13 = arith.constant 3.200000e+01 : f32
      %16 = vector.broadcast %cst_13 : f32 to vector<128x1xf32>
      %17 = arith.divf %15, %16 : vector<128x1xf32>
      %18 = vector.broadcast %17 : vector<128x1xf32> to vector<128x32xf32>
      %19 = arith.subf %13, %18 : vector<128x32xf32>
      %20 = arith.mulf %19, %19 : vector<128x32xf32>
      %cst_14 = arith.constant dense<0.000000e+00> : vector<128xf32>
      %21 = vector.multi_reduction <add>, %20, %cst_14 [1] : vector<128x32xf32> to vector<128xf32>
      %22 = vector.shape_cast %21 : vector<128xf32> to vector<128x1xf32>
      %cst_15 = arith.constant 3.200000e+01 : f32
      %23 = vector.broadcast %cst_15 : f32 to vector<128x1xf32>
      %24 = arith.divf %22, %23 : vector<128x1xf32>
      %cst_16 = arith.constant 9.99999974E-6 : f32
      %25 = vector.broadcast %cst_16 : f32 to vector<128x1xf32>
      %26 = arith.addf %24, %25 : vector<128x1xf32>
      %27 = math.rsqrt %26 : vector<128x1xf32>
      %28 = vector.broadcast %27 : vector<128x1xf32> to vector<128x32xf32>
      %29 = arith.mulf %19, %28 : vector<128x32xf32>
      %30 = math.absf %29 : vector<128x32xf32>
      %cst_17 = arith.constant dense<0xFF800000> : vector<128xf32>
      %31 = vector.multi_reduction <maximumf>, %30, %cst_17 [1] : vector<128x32xf32> to vector<128xf32>
      %32 = vector.shape_cast %31 : vector<128xf32> to vector<128x1xf32>
      %cst_18 = arith.constant 9.99999974E-6 : f32
      %33 = vector.broadcast %cst_18 : f32 to vector<128x1xf32>
      %34 = arith.maximumf %32, %33 : vector<128x1xf32>
      %35 = tpu.reciprocal %34 : vector<128x1xf32> -> vector<128x1xf32>
      %cst_19 = arith.constant 1.270000e+02 : f32
      %36 = vector.broadcast %cst_19 : f32 to vector<128x1xf32>
      %37 = arith.mulf %36, %35 : vector<128x1xf32>
      %38 = vector.broadcast %37 : vector<128x1xf32> to vector<128x32xf32>
      %39 = arith.mulf %29, %38 : vector<128x32xf32>
      %cst_20 = arith.constant -1.270000e+02 : f32
      %cst_21 = arith.constant 1.270000e+02 : f32
      %40 = vector.broadcast %cst_20 : f32 to vector<128x32xf32>
      %41 = arith.maximumf %40, %39 : vector<128x32xf32>
      %42 = vector.broadcast %cst_21 : f32 to vector<128x32xf32>
      %43 = arith.minimumf %42, %41 : vector<128x32xf32>
      %44 = math.roundeven %43 : vector<128x32xf32>
      %45 = arith.truncf %44 : vector<128x32xf32> to vector<128x32xbf16>
      %c0_22 = arith.constant 0 : index
      %c0_23 = arith.constant 0 : index
      %46 = vector.load %arg7[%c0_22, %c0_23] : memref<128x32xbf16, #tpu.memory_space<vmem>>, vector<128x32xbf16>
      tpu.vector_store %arg7[%c0_22, %c0_23], %45 {strides = array<i32>} : memref<128x32xbf16, #tpu.memory_space<vmem>>, vector<128x32xbf16>,
      %c0_24 = arith.constant 0 : index
      %47 = memref.load %arg5[%c0_24] : memref<1xf32, #tpu.memory_space<smem>>
      %48 = vector.broadcast %47 : f32 to vector<128x1xf32>
      %49 = arith.mulf %34, %48 : vector<128x1xf32>
      %c0_25 = arith.constant 0 : index
      %c0_26 = arith.constant 0 : index
      %50 = vector.load %arg8[%c0_25, %c0_26] : memref<128x1xf32, #tpu.memory_space<vmem>>, vector<128x1xf32>
      tpu.vector_store %arg8[%c0_25, %c0_26], %49 {strides = array<i32>} : memref<128x1xf32, #tpu.memory_space<vmem>>, vector<128x1xf32>,
    } else {
    }
    %c0 = arith.constant 0 : index
    %c0_1 = arith.constant 0 : index
    %3 = vector.load %arg7[%c0, %c0_1] : memref<128x32xbf16, #tpu.memory_space<vmem>>, vector<128x32xbf16>
    %c0_2 = arith.constant 0 : index
    %c0_3 = arith.constant 0 : index
    %4 = vector.load %arg3[%c0_2, %c0_3] : memref<32x128xbf16, #tpu.memory_space<vmem>>, vector<32x128xbf16>
    %cst = arith.constant dense<0.000000e+00> : vector<128x128xf32>
    %5 = tpu.matmul %3, %4, %cst {dimension_numbers = #tpu.dot_dimension_numbers<[1], [0], [0], [1], [0, 0, 1, 1], [], []>} : vector<128x32xbf16>, vector<32x128xbf16>, vector<128x128xf32> -> vector<128x128xf32>
    %c0_4 = arith.constant 0 : index
    %c0_5 = arith.constant 0 : index
    %6 = vector.load %arg8[%c0_4, %c0_5] : memref<128x1xf32, #tpu.memory_space<vmem>>, vector<128x1xf32>
    %7 = vector.broadcast %6 : vector<128x1xf32> to vector<128x128xf32>
    %8 = arith.mulf %5, %7 : vector<128x128xf32>
    %c0_6 = arith.constant 0 : index
    %c0_7 = arith.constant 0 : index
    %9 = vector.load %arg4[%c0_6, %c0_7] : memref<1x128xf32, #tpu.memory_space<vmem>>, vector<1x128xf32>
    %10 = vector.broadcast %9 : vector<1x128xf32> to vector<128x128xf32>
    %11 = arith.addf %8, %10 : vector<128x128xf32>
    %c0_8 = arith.constant 0 : index
    %c0_9 = arith.constant 0 : index
    %12 = vector.load %arg6[%c0_8, %c0_9] : memref<128x128xf32, #tpu.memory_space<vmem>>, vector<128x128xf32>
    tpu.vector_store %arg6[%c0_8, %c0_9], %11 {strides = array<i32>} : memref<128x128xf32, #tpu.memory_space<vmem>>, vector<128x128xf32>,
    return
  }
  func.func @transform_0(%arg0: i32, %arg1: i32) -> (i32, i32) {
    %c0_i32 = arith.constant 0 : i32
    %c0_i32_0 = arith.constant 0 : i32
    return %arg0, %c0_i32 : i32, i32
  }
  func.func @transform_1(%arg0: i32, %arg1: i32) -> (i32, i32) {
    %c0_i32 = arith.constant 0 : i32
    %c0_i32_0 = arith.constant 0 : i32
    return %c0_i32, %arg1 : i32, i32
  }
  func.func @transform_2(%arg0: i32, %arg1: i32) -> (i32, i32) {
    %c0_i32 = arith.constant 0 : i32
    %c0_i32_0 = arith.constant 0 : i32
    return %c0_i32, %arg1 : i32, i32
  }
  func.func @transform_3(%arg0: i32, %arg1: i32) -> i32 {
    %c0_i32 = arith.constant 0 : i32
    %c0_i32_0 = arith.constant 0 : i32
    return %c0_i32 : i32
  }
  func.func @transform_4(%arg0: i32, %arg1: i32) -> (i32, i32) {
    %c0_i32 = arith.constant 0 : i32
    return %arg0, %arg1 : i32, i32
  }
}

</mosaic_0001>

<bundles_post_ra>
// kernel: tpu_custom_call.1
= control target key start
LH: loop header
LB: loop body
LE: loop exit
PB: predicated region body
PF: predicated region fallthrough
CT: control target
= control target key end

     0   :  { %vm40_vm0 = vcmask 261120   ;;  %s1364_s0 = inlined_call_operand.vmem [shape: f32[128,32], index: 0, kind: input, shape index: {}]   ;;  %s1365_s1 = inlined_call_operand.vmem [shape: bf16[32,128], index: 1, kind: input, shape index: {}]   ;;  %s1366_s2 = inlined_call_operand.vmem [shape: f32[1,128], index: 2, kind: input, shape index: {}]   ;;  %s1367_s3 = inlined_call_operand.<no memory space> [shape: f32[1], index: 3, kind: input, shape index: {}]   ;;  %s1368_s4 = inlined_call_operand.hbm [shape: f32[128,128], index: 4, kind: output, shape index: {}]  }
   0x1   :  { %v24_v0 = vld [vmem:[%s1364_s0] sm:$0xff]  ;;  %v25_v2 = vld [vmem:[%s1364_s0 + $0x8] sm:$0xff]  ;;  %v26_v8 = vld [vmem:[%s1364_s0 + $0x10] sm:$0xff] }
   0x2   :  { %v32_v1 = vld [vmem:[%s1364_s0 + $0x40] sm:$0xff]  ;;  %v41_v3 = vsel %vm40_vm0, %v24_v0, 0.0  ;;  %v33_v5 = vld [vmem:[%s1364_s0 + $0x48] sm:$0xff]  ;;  %v44_v6 = vsel %vm40_vm0, %v25_v2, 0.0  ;;  %v27_v9 = vld [vmem:[%s1364_s0 + $0x18] sm:$0xff]  ;;  %v47_v10 = vsel %vm40_vm0, %v26_v8, 0.0 }
   0x3   :  { %v65_v4 = vsel %vm40_vm0, %v32_v1, 0.0  ;;  %42 = vadd.xlane.f32.xlu0 %v41_v3  ;;  %v68_v7 = vsel %vm40_vm0, %v33_v5, 0.0  ;;  %v50_v11 = vsel %vm40_vm0, %v27_v9, 0.0 }
   0x4   :  { %66 = vadd.xlane.f32.xlu1 %v65_v4 }
   0x7   :  { %45 = vadd.xlane.f32.xlu0 %v44_v6 }
   0x8   :  { %69 = vadd.xlane.f32.xlu1 %v68_v7 }
   0x9   :  { %10 = vsyncpa [#allocation6], 0  ;;  %v1019_v12 = vld [vmem:[%s1364_s0 + $0x50] sm:$0xff]  ;;  %v1024_v13 = vld [vmem:[%s1364_s0 + $0x58] sm:$0xff]  ;;  %vm460_vm1 = vcmask 7168  }
   0xa   :  { %v71_v14 = vsel %vm40_vm0, %v1019_v12, 0.0  ;;  %v74_v15 = vsel %vm40_vm0, %v1024_v13, 0.0  ;;  %v1033_v16 = vld [vmem:[%s1364_s0 + $0x20] sm:$0xff]  ;;  %v1038_v17 = vld [vmem:[%s1364_s0 + $0x28] sm:$0xff]  ;;  %v1061_v24 = vld [vmem:[%s1364_s0 + $0x30] sm:$0xff] }
   0xb   :  { %48 = vadd.xlane.f32.xlu0 %v47_v10  ;;  %v53_v18 = vsel %vm40_vm0, %v1033_v16, 0.0  ;;  %v56_v19 = vsel %vm40_vm0, %v1038_v17, 0.0  ;;  %v1047_v20 = vld [vmem:[%s1364_s0 + $0x60] sm:$0xff]  ;;  %v1052_v21 = vld [vmem:[%s1364_s0 + $0x68] sm:$0xff]  ;;  %v1066_v25 = vld [vmem:[%s1364_s0 + $0x38] sm:$0xff]  ;;  %v59_v26 = vsel %vm40_vm0, %v1061_v24, 0.0 }
   0xc   :  { %51 = vadd.xlane.f32.xlu1 %v50_v11  ;;  %v77_v22 = vsel %vm40_vm0, %v1047_v20, 0.0  ;;  %v80_v23 = vsel %vm40_vm0, %v1052_v21, 0.0  ;;  %v62_v27 = vsel %vm40_vm0, %v1066_v25, 0.0  ;;  %v1075_v28 = vld [vmem:[%s1364_s0 + $0x70] sm:$0xff]  ;;  %v1080_v29 = vld [vmem:[%s1364_s0 + $0x78] sm:$0xff] }
   0xd   :  { %v83_v30 = vsel %vm40_vm0, %v1075_v28, 0.0  ;;  %v86_v31 = vsel %vm40_vm0, %v1080_v29, 0.0 }
   0xf   :  { %72 = vadd.xlane.f32.xlu0 %v71_v14 }
  0x10   :  { %75 = vadd.xlane.f32.xlu1 %v74_v15 }
  0x13   :  { %54 = vadd.xlane.f32.xlu0 %v53_v18 }
  0x14   :  { %57 = vadd.xlane.f32.xlu1 %v56_v19 }
  0x17   :  { %78 = vadd.xlane.f32.xlu0 %v77_v22 }
  0x18   :  { %81 = vadd.xlane.f32.xlu1 %v80_v23 }
  0x1b   :  { %60 = vadd.xlane.f32.xlu0 %v59_v26 }
  0x1c   :  { %63 = vadd.xlane.f32.xlu1 %v62_v27 }
  0x1f   :  { %84 = vadd.xlane.f32.xlu0 %v83_v30 }
  0x20   :  { %87 = vadd.xlane.f32.xlu1 %v86_v31 }
  0x90   :  { %v43_v32 = vpop.xlane.xlu0 %42 }
  0x91   :  { %v67_v33 = vpop.xlane.xlu1 %66  ;;  %v90_v34 = vmul.f32 0.03125, %v43_v32 }
  0x92   :  { %v98_v35 = vmul.f32 0.03125, %v67_v33 }
  0x93   :  { %v1086_v36 = vsub.f32 %v24_v0, %v90_v34 }
  0x94   :  { %v1088_v37 = vsub.f32 %v32_v1, %v98_v35  ;;  %v46_v38 = vpop.xlane.xlu0 %45 }
  0x95   :  { %v70_v39 = vpop.xlane.xlu1 %69  ;;  %v91_v40 = vmul.f32 0.03125, %v46_v38  ;;  %v122_v42 = vmul.f32 %v1086_v36, %v1086_v36 }
  0x96   :  { %v99_v41 = vmul.f32 0.03125, %v70_v39  ;;  %v130_v43 = vmul.f32 %v1088_v37, %v1088_v37 }
  0x97   :  { %v1094_v44 = vsub.f32 %v25_v2, %v91_v40  ;;  %v138_v46 = vsel %vm40_vm0, %v122_v42, 0.0 }
  0x98   :  { %v1096_v45 = vsub.f32 %v33_v5, %v99_v41  ;;  %139 = vadd.xlane.f32.xlu0 %v138_v46  ;;  %v49_v47 = vpop.xlane.xlu0 %48  ;;  %v162_v49 = vsel %vm40_vm0, %v130_v43, 0.0 }
  0x99   :  { %v52_v48 = vpop.xlane.xlu1 %51  ;;  %v92_v50 = vmul.f32 0.03125, %v49_v47  ;;  %v123_v52 = vmul.f32 %v1094_v44, %v1094_v44 }
  0x9a   :  { %v93_v51 = vmul.f32 0.03125, %v52_v48  ;;  %v131_v53 = vmul.f32 %v1096_v45, %v1096_v45 }
  0x9b   :  { %v1104_v54 = vsub.f32 %v26_v8, %v92_v50  ;;  %v141_v56 = vsel %vm40_vm0, %v123_v52, 0.0 }
  0x9c   :  { %v1106_v55 = vsub.f32 %v27_v9, %v93_v51  ;;  %163 = vadd.xlane.f32.xlu0 %v162_v49  ;;  %142 = vadd.xlane.f32.xlu1 %v141_v56  ;;  %v73_v57 = vpop.xlane.xlu0 %72  ;;  %v165_v59 = vsel %vm40_vm0, %v131_v53, 0.0 }
  0x9d   :  { %v76_v58 = vpop.xlane.xlu1 %75  ;;  %v100_v60 = vmul.f32 0.03125, %v73_v57  ;;  %v124_v62 = vmul.f32 %v1104_v54, %v1104_v54 }
  0x9e   :  { %v101_v61 = vmul.f32 0.03125, %v76_v58  ;;  %v125_v63 = vmul.f32 %v1106_v55, %v1106_v55 }
  0x9f   :  { %v1115_v0 = vsub.f32 %v1019_v12, %v100_v60  ;;  %v144_v2 = vsel %vm40_vm0, %v124_v62, 0.0 }
  0xa0   :  { %v1118_v1 = vsub.f32 %v1024_v13, %v101_v61  ;;  %166 = vadd.xlane.f32.xlu1 %v165_v59  ;;  %145 = vadd.xlane.f32.xlu0 %v144_v2  ;;  %v55_v3 = vpop.xlane.xlu0 %54  ;;  %v147_v5 = vsel %vm40_vm0, %v125_v63, 0.0 }
  0xa1   :  { %v58_v4 = vpop.xlane.xlu1 %57  ;;  %v94_v6 = vmul.f32 0.03125, %v55_v3  ;;  %v132_v8 = vmul.f32 %v1115_v0, %v1115_v0 }
  0xa2   :  { %v95_v7 = vmul.f32 0.03125, %v58_v4  ;;  %v133_v9 = vmul.f32 %v1118_v1, %v1118_v1 }
  0xa3   :  { %v1127_v10 = vsub.f32 %v1033_v16, %v94_v6  ;;  %v168_v12 = vsel %vm40_vm0, %v132_v8, 0.0 }
  0xa4   :  { %v1130_v11 = vsub.f32 %v1038_v17, %v95_v7  ;;  %148 = vadd.xlane.f32.xlu1 %v147_v5  ;;  %169 = vadd.xlane.f32.xlu0 %v168_v12  ;;  %v79_v13 = vpop.xlane.xlu0 %78  ;;  %v171_v15 = vsel %vm40_vm0, %v133_v9, 0.0 }
  0xa5   :  { %v82_v14 = vpop.xlane.xlu1 %81  ;;  %v102_v18 = vmul.f32 0.03125, %v79_v13  ;;  %v126_v22 = vmul.f32 %v1127_v10, %v1127_v10 }
  0xa6   :  { %v103_v19 = vmul.f32 0.03125, %v82_v14  ;;  %v127_v16 = vmul.f32 %v1130_v11, %v1130_v11 }
  0xa7   :  { %v1139_v23 = vsub.f32 %v1047_v20, %v102_v18  ;;  %v150_v26 = vsel %vm40_vm0, %v126_v22, 0.0 }
  0xa8   :  { %v1142_v17 = vsub.f32 %v1052_v21, %v103_v19  ;;  %172 = vadd.xlane.f32.xlu1 %v171_v15  ;;  %151 = vadd.xlane.f32.xlu0 %v150_v26  ;;  %v61_v27 = vpop.xlane.xlu0 %60  ;;  %v153_v31 = vsel %vm40_vm0, %v127_v16, 0.0 }
  0xa9   :  { %v64_v30 = vpop.xlane.xlu1 %63  ;;  %v96_v32 = vmul.f32 0.03125, %v61_v27  ;;  %v134_v34 = vmul.f32 %v1139_v23, %v1139_v23 }
  0xaa   :  { %v97_v33 = vmul.f32 0.03125, %v64_v30  ;;  %v135_v20 = vmul.f32 %v1142_v17, %v1142_v17 }
  0xab   :  { %v1151_v35 = vsub.f32 %v1061_v24, %v96_v32  ;;  %v174_v38 = vsel %vm40_vm0, %v134_v34, 0.0 }
  0xac   :  { %v1154_v21 = vsub.f32 %v1066_v25, %v97_v33  ;;  %154 = vadd.xlane.f32.xlu1 %v153_v31  ;;  %175 = vadd.xlane.f32.xlu0 %v174_v38  ;;  %v85_v39 = vpop.xlane.xlu0 %84  ;;  %v177_v41 = vsel %vm40_vm0, %v135_v20, 0.0 }
  0xad   :  { %v88_v40 = vpop.xlane.xlu1 %87  ;;  %v104_v42 = vmul.f32 0.03125, %v85_v39  ;;  %v128_v46 = vmul.f32 %v1151_v35, %v1151_v35 }
  0xae   :  { %v105_v43 = vmul.f32 0.03125, %v88_v40  ;;  %v129_v24 = vmul.f32 %v1154_v21, %v1154_v21 }
  0xaf   :  { %v1163_v47 = vsub.f32 %v1075_v28, %v104_v42  ;;  %v156_v48 = vsel %vm40_vm0, %v128_v46, 0.0 }
  0xb0   :  { %v1166_v25 = vsub.f32 %v1080_v29, %v105_v43  ;;  %178 = vadd.xlane.f32.xlu1 %v177_v41  ;;  %157 = vadd.xlane.f32.xlu0 %v156_v48  ;;  %v159_v49 = vsel %vm40_vm0, %v129_v24, 0.0 }
  0xb1   :  { %v136_v50 = vmul.f32 %v1163_v47, %v1163_v47 }
  0xb2   :  { %v137_v51 = vmul.f32 %v1166_v25, %v1166_v25 }
  0xb3   :  { %v180_v52 = vsel %vm40_vm0, %v136_v50, 0.0 }
  0xb4   :  { %160 = vadd.xlane.f32.xlu1 %v159_v49  ;;  %181 = vadd.xlane.f32.xlu0 %v180_v52  ;;  %v183_v28 = vsel %vm40_vm0, %v137_v51, 0.0 }
  0xb8   :  { %184 = vadd.xlane.f32.xlu1 %v183_v28 }
 0x125   :  { %v140_v29 = vpop.xlane.xlu0 %139 }
 0x126   :  { %v186_v53 = vmul.f32 0.03125, %v140_v29 }
 0x128   :  { %v202_v56 = vadd.f32 1e-05, %v186_v53 }
 0x129   :  { %v143_v57 = vpop.xlane.xlu1 %142  ;;  %v164_v58 = vpop.xlane.xlu0 %163 }
 0x12a   :  { %875 = vrsqrt.f32 %v202_v56  ;;  %v187_v59 = vmul.f32 0.03125, %v143_v57  ;;  %v194_v60 = vmul.f32 0.03125, %v164_v58 }
 0x12c   :  { %v203_v61 = vadd.f32 1e-05, %v187_v59  ;;  %v210_v62 = vadd.f32 1e-05, %v194_v60 }
 0x12d   :  { %v167_v63 = vpop.xlane.xlu1 %166  ;;  %v146_v2 = vpop.xlane.xlu0 %145 }
 0x12e   :  { %877 = vrsqrt.f32 %v203_v61  ;;  %v195_v3 = vmul.f32 0.03125, %v167_v63  ;;  %v188_v4 = vmul.f32 0.03125, %v146_v2 }
 0x12f   :  { %879 = vrsqrt.f32 %v210_v62 }
 0x130   :  { %v211_v5 = vadd.f32 1e-05, %v195_v3  ;;  %v204_v6 = vadd.f32 1e-05, %v188_v4 }
 0x131   :  { %v149_v7 = vpop.xlane.xlu1 %148  ;;  %v170_v8 = vpop.xlane.xlu0 %169 }
 0x132   :  { %881 = vrsqrt.f32 %v211_v5  ;;  %v189_v9 = vmul.f32 0.03125, %v149_v7  ;;  %v196_v12 = vmul.f32 0.03125, %v170_v8 }
 0x133   :  { %883 = vrsqrt.f32 %v204_v6 }
 0x134   :  { %v876_v13 = vpop.eup %875  ;;  %v205_v14 = vadd.f32 1e-05, %v189_v9  ;;  %v212_v15 = vadd.f32 1e-05, %v196_v12 }
 0x135   :  { %v173_v18 = vpop.xlane.xlu1 %172  ;;  %v152_v19 = vpop.xlane.xlu0 %151  ;;  %v1177_v22 = vmul.f32 %v876_v13, %v1086_v36 }
 0x136   :  { %885 = vrsqrt.f32 %v205_v14  ;;  %v197_v16 = vmul.f32 0.03125, %v173_v18  ;;  %v190_v26 = vmul.f32 0.03125, %v152_v19 }
 0x137   :  { %887 = vrsqrt.f32 %v212_v15  ;;  %v250_v27 = vand.u32 2147483647, %v1177_v22 }
 0x138   :  { %v878_v30 = vpop.eup %877  ;;  %v213_v31 = vadd.f32 1e-05, %v197_v16  ;;  %v206_v32 = vadd.f32 1e-05, %v190_v26 }
 0x139   :  { %v880_v33 = vpop.eup %879  ;;  %v155_v34 = vpop.xlane.xlu1 %154  ;;  %v266_v38 = vsel %vm40_vm0, %v250_v27, -inf  ;;  %v1182_v39 = vmul.f32 %v878_v30, %v1094_v44 }
 0x13a   :  { %v176_v20 = vpop.xlane.xlu0 %175  ;;  %889 = vrsqrt.f32 %v213_v31  ;;  %v191_v36 = vmul.f32 0.03125, %v155_v34  ;;  %267 = vmax.xlane.f32.xlu0 %v266_v38  ;;  %v1185_v41 = vmul.f32 %v880_v33, %v1088_v37 }
 0x13b   :  { %v198_v40 = vmul.f32 0.03125, %v176_v20  ;;  %891 = vrsqrt.f32 %v206_v32  ;;  %v251_v42 = vand.u32 2147483647, %v1182_v39 }
 0x13c   :  { %v882_v43 = vpop.eup %881  ;;  %v207_v46 = vadd.f32 1e-05, %v191_v36  ;;  %v258_v48 = vand.u32 2147483647, %v1185_v41 }
 0x13d   :  { %v214_v24 = vadd.f32 1e-05, %v198_v40  ;;  %v884_v49 = vpop.eup %883  ;;  %v179_v50 = vpop.xlane.xlu1 %178  ;;  %v269_v44 = vsel %vm40_vm0, %v251_v42, -inf  ;;  %v1191_v52 = vmul.f32 %v882_v43, %v1096_v45 }
 0x13e   :  { %v158_v51 = vpop.xlane.xlu0 %157  ;;  %893 = vrsqrt.f32 %v207_v46  ;;  %v199_v28 = vmul.f32 0.03125, %v179_v50  ;;  %270 = vmax.xlane.f32.xlu1 %v269_v44  ;;  %v290_v29 = vsel %vm40_vm0, %v258_v48, -inf  ;;  %v1196_v56 = vmul.f32 %v884_v49, %v1104_v54 }
 0x13f   :  { %v192_v37 = vmul.f32 0.03125, %v158_v51  ;;  %895 = vrsqrt.f32 %v214_v24  ;;  %291 = vmax.xlane.f32.xlu0 %v290_v29  ;;  %v259_v53 = vand.u32 2147483647, %v1191_v52 }
 0x140   :  { %v886_v57 = vpop.eup %885  ;;  %v215_v58 = vadd.f32 1e-05, %v199_v28  ;;  %v252_v63 = vand.u32 2147483647, %v1196_v56 }
 0x141   :  { %v208_v59 = vadd.f32 1e-05, %v192_v37  ;;  %v888_v60 = vpop.eup %887  ;;  %v161_v61 = vpop.xlane.xlu1 %160  ;;  %v293_v62 = vsel %vm40_vm0, %v259_v53, -inf  ;;  %v1201_v2 = vmul.f32 %v886_v57, %v1106_v55  ;;  %v963_v53 = vmov 0  }
 0x142   :  { %v182_v45 = vpop.xlane.xlu0 %181  ;;  %897 = vrsqrt.f32 %v215_v58  ;;  %v193_v3 = vmul.f32 0.03125, %v161_v61  ;;  %294 = vmax.xlane.f32.xlu1 %v293_v62  ;;  %v1204_v54 = vmul.f32 %v888_v60, %v1115_v0  ;;  %v272_v5 = vsel %vm40_vm0, %v252_v63, -inf  ;;  %871 = vset.pattern.permute.xlu0 %v963_v53  ;;  %v873_v58 = vld [vmem:[%s1365_s1] sm:$0xff]  }
 0x143   :  { %v200_v4 = vmul.f32 0.03125, %v182_v45  ;;  %899 = vrsqrt.f32 %v208_v59  ;;  %v253_v6 = vand.u32 2147483647, %v1201_v2  ;;  %273 = vmax.xlane.f32.xlu0 %v272_v5  ;;  %872 = vset.pattern.permute.xlu1 %v963_v53  ;;  %v1265_v59 = vstv %s1367_s3 }
 0x144   :  { %v890_v7 = vpop.eup %889  ;;  %v209_v8 = vadd.f32 1e-05, %v193_v3  ;;  %v260_v12 = vand.u32 2147483647, %v1204_v54  ;;  %827 = vmatprep.subr.bf16.mxu0 %v873_v58  ;;  %847 = vmatprep.subr.bf16.mxu1 %v873_v58 }
 0x145   :  { %v216_v9 = vadd.f32 1e-05, %v200_v4  ;;  %v892_v55 = vpop.eup %891  ;;  %v185_v13 = vpop.xlane.xlu1 %184  ;;  %v275_v14 = vsel %vm40_vm0, %v253_v6, -inf  ;;  %v1211_v15 = vmul.f32 %v890_v7, %v1118_v1  ;;  %828 = vmatpush3.bf16.msra.mxu0 %v873_v58  ;;  %849 = vmatpush3.bf16.msra.mxu1 %v873_v58 }
 0x146   :  { %901 = vrsqrt.f32 %v209_v8  ;;  %v201_v0 = vmul.f32 0.03125, %v185_v13  ;;  %276 = vmax.xlane.f32.xlu1 %v275_v14  ;;  %v296_v18 = vsel %vm40_vm0, %v260_v12, -inf  ;;  %v1215_v19 = vmul.f32 %v892_v55, %v1127_v10 }
 0x147   :  { %903 = vrsqrt.f32 %v216_v9  ;;  %v261_v16 = vand.u32 2147483647, %v1211_v15  ;;  %297 = vmax.xlane.f32.xlu0 %v296_v18 }
 0x148   :  { %v894_v26 = vpop.eup %893  ;;  %v217_v27 = vadd.f32 1e-05, %v201_v0  ;;  %v254_v30 = vand.u32 2147483647, %v1215_v19 }
 0x149   :  { %v896_v31 = vpop.eup %895  ;;  %v299_v1 = vsel %vm40_vm0, %v261_v16, -inf  ;;  %v1221_v32 = vmul.f32 %v894_v26, %v1130_v11 }
 0x14a   :  { %905 = vrsqrt.f32 %v217_v27  ;;  %300 = vmax.xlane.f32.xlu1 %v299_v1  ;;  %v278_v33 = vsel %vm40_vm0, %v254_v30, -inf  ;;  %v1225_v10 = vmul.f32 %v896_v31, %v1139_v23 }
 0x14b   :  { %v255_v34 = vand.u32 2147483647, %v1221_v32  ;;  %279 = vmax.xlane.f32.xlu0 %v278_v33 }
 0x14c   :  { %v898_v20 = vpop.eup %897  ;;  %v262_v38 = vand.u32 2147483647, %v1225_v10 }
 0x14d   :  { %v900_v36 = vpop.eup %899  ;;  %v281_v40 = vsel %vm40_vm0, %v255_v34, -inf  ;;  %v1231_v42 = vmul.f32 %v898_v20, %v1142_v17 }
 0x14e   :  { %282 = vmax.xlane.f32.xlu1 %v281_v40  ;;  %v302_v11 = vsel %vm40_vm0, %v262_v38, -inf  ;;  %v1235_v43 = vmul.f32 %v900_v36, %v1151_v35 }
 0x14f   :  { %v263_v23 = vand.u32 2147483647, %v1231_v42  ;;  %303 = vmax.xlane.f32.xlu0 %v302_v11 }
 0x150   :  { %v902_v46 = vpop.eup %901  ;;  %v256_v24 = vand.u32 2147483647, %v1235_v43 }
 0x151   :  { %v904_v48 = vpop.eup %903  ;;  %v305_v49 = vsel %vm40_vm0, %v263_v23, -inf  ;;  %v1241_v50 = vmul.f32 %v902_v46, %v1154_v21 }
 0x152   :  { %306 = vmax.xlane.f32.xlu1 %v305_v49  ;;  %v284_v17 = vsel %vm40_vm0, %v256_v24, -inf  ;;  %v1245_v51 = vmul.f32 %v904_v48, %v1163_v47 }
 0x153   :  { %v257_v35 = vand.u32 2147483647, %v1241_v50  ;;  %285 = vmax.xlane.f32.xlu0 %v284_v17 }
 0x154   :  { %v906_v44 = vpop.eup %905  ;;  %v264_v28 = vand.u32 2147483647, %v1245_v51 }
 0x155   :  { %v287_v37 = vsel %vm40_vm0, %v257_v35, -inf  ;;  %v1251_v29 = vmul.f32 %v906_v44, %v1166_v25  ;;  %v874_v25 = vld [vmem:[%s1365_s1 + $0x8] sm:$0xff]  }
 0x156   :  { %288 = vmax.xlane.f32.xlu1 %v287_v37  ;;  %v308_v21 = vsel %vm40_vm0, %v264_v28, -inf  ;;  %829 = vmatprep.subr.bf16.mxu0 %v874_v25 }
 0x157   :  { %v265_v47 = vand.u32 2147483647, %v1251_v29  ;;  %309 = vmax.xlane.f32.xlu0 %v308_v21  ;;  %848 = vmatprep.subr.bf16.mxu1 %v874_v25 }
 0x158   :  { %830 = vmatpush3.bf16.msra.mxu0 %v874_v25  ;;  %850 = vmatpush3.bf16.msra.mxu1 %v874_v25 }
 0x159   :  { %v311_v57 = vsel %vm40_vm0, %v265_v47, -inf }
 0x15a   :  { %312 = vmax.xlane.f32.xlu1 %v311_v57 }
 0x1c7   :  { %v268_v60 = vpop.xlane.xlu0 %267 }
 0x1c8   :  { %v314_v61 = vmax.f32 %v268_v60, 1e-05 }
 0x1ca   :  { %907 = vrcp.f32 %v314_v61  ;;  %v444_v45 = vmul.f32 %v1265_v59, %v314_v61 }
 0x1cb   :  { %v271_v62 = vpop.xlane.xlu1 %270 }
 0x1cc   :  { %461 = vst.msk [vmem:[#allocation3] sm:$0xff] %vm460_vm1, %v444_v45  ;;  %v315_v63 = vmax.f32 %v271_v62, 1e-05  ;;  %v292_v3 = vpop.xlane.xlu0 %291 }
 0x1cd   :  { %v322_v4 = vmax.f32 %v292_v3, 1e-05 }
 0x1ce   :  { %909 = vrcp.f32 %v315_v63  ;;  %v445_v5 = vmul.f32 %v1265_v59, %v315_v63 }
 0x1cf   :  { %911 = vrcp.f32 %v322_v4  ;;  %v452_v6 = vmul.f32 %v1265_v59, %v322_v4  ;;  %v295_v7 = vpop.xlane.xlu1 %294 }
 0x1d0   :  { %462 = vst.msk [vmem:[#allocation3 + $0x8] sm:$0xff] %vm460_vm1, %v445_v5  ;;  %v323_v8 = vmax.f32 %v295_v7, 1e-05  ;;  %v274_v9 = vpop.xlane.xlu0 %273 }
 0x1d1   :  { %469 = vst.msk [vmem:[#allocation3 + $0x40] sm:$0xff] %vm460_vm1, %v452_v6  ;;  %v316_v55 = vmax.f32 %v274_v9, 1e-05 }
 0x1d2   :  { %913 = vrcp.f32 %v323_v8  ;;  %v453_v12 = vmul.f32 %v1265_v59, %v323_v8 }
 0x1d3   :  { %v277_v13 = vpop.xlane.xlu1 %276  ;;  %v623_v14 = vld [vmem:[#allocation3] sm:$0xff]  ;;  %915 = vrcp.f32 %v316_v55  ;;  %v446_v18 = vmul.f32 %v1265_v59, %v316_v55 }
 0x1d4   :  { %v908_v0 = vpop.eup %907  ;;  %470 = vst.msk [vmem:[#allocation3 + $0x48] sm:$0xff] %vm460_vm1, %v453_v12  ;;  %v317_v16 = vmax.f32 %v277_v13, 1e-05  ;;  %641 = vperm.xlu0 %871, %v623_v14   ;;  %v298_v27 = vpop.xlane.xlu0 %297 }
 0x1d5   :  { %v346_v26 = vmul.f32 127.0, %v908_v0  ;;  %463 = vst.msk [vmem:[#allocation3 + $0x10] sm:$0xff] %vm460_vm1, %v446_v18  ;;  %v324_v31 = vmax.f32 %v298_v27, 1e-05 }
 0x1d6   :  { %917 = vrcp.f32 %v317_v16  ;;  %v447_v30 = vmul.f32 %v1265_v59, %v317_v16 }
 0x1d7   :  { %v362_v1 = vmul.f32 %v346_v26, %v1177_v22  ;;  %v301_v33 = vpop.xlane.xlu1 %300  ;;  %v624_v34 = vld [vmem:[#allocation3 + $0x8] sm:$0xff]  ;;  %919 = vrcp.f32 %v324_v31  ;;  %v454_v38 = vmul.f32 %v1265_v59, %v324_v31 }
 0x1d8   :  { %v910_v20 = vpop.eup %909  ;;  %464 = vst.msk [vmem:[#allocation3 + $0x18] sm:$0xff] %vm460_vm1, %v447_v30  ;;  %v325_v36 = vmax.f32 %v301_v33, 1e-05  ;;  %646 = vperm.xlu1 %872, %v624_v34   ;;  %v280_v23 = vpop.xlane.xlu0 %279 }
 0x1d9   :  { %v912_v40 = vpop.eup %911  ;;  %v347_v11 = vmul.f32 127.0, %v910_v20  ;;  %471 = vst.msk [vmem:[#allocation3 + $0x50] sm:$0xff] %vm460_vm1, %v454_v38  ;;  %v318_v22 = vmax.f32 %v280_v23, 1e-05  ;;  %v790_v48 = vclamps-f32 %v362_v1, 127.0 }
 0x1da   :  { %v354_v46 = vmul.f32 127.0, %v912_v40  ;;  %921 = vrcp.f32 %v325_v36  ;;  %v455_v24 = vmul.f32 %v1265_v59, %v325_v36 }
 0x1db   :  { %v363_v49 = vmul.f32 %v347_v11, %v1182_v39  ;;  %v283_v17 = vpop.xlane.xlu1 %282  ;;  %v632_v35 = vld [vmem:[#allocation3 + $0x48] sm:$0xff]  ;;  %923 = vrcp.f32 %v318_v22  ;;  %v448_v37 = vmul.f32 %v1265_v59, %v318_v22 }
 0x1dc   :  { %v914_v44 = vpop.eup %913  ;;  %v370_v28 = vmul.f32 %v354_v46, %v1185_v41  ;;  %472 = vst.msk [vmem:[#allocation3 + $0x58] sm:$0xff] %vm460_vm1, %v455_v24  ;;  %v319_v53 = vmax.f32 %v283_v17, 1e-05  ;;  %686 = vperm.xlu0 %871, %v632_v35   ;;  %v304_v57 = vpop.xlane.xlu0 %303  ;;  %v625_v58 = vld [vmem:[#allocation3 + $0x10] sm:$0xff]  ;;  %v851_v41 = vround.rtne.f32 %v790_v48 }
 0x1dd   :  { %v791_v21 = vclamps-f32 %v363_v49, 127.0  ;;  %v355_v47 = vmul.f32 127.0, %v914_v44  ;;  %v916_v25 = vpop.eup %915  ;;  %465 = vst.msk [vmem:[#allocation3 + $0x20] sm:$0xff] %vm460_vm1, %v448_v37  ;;  %v326_v61 = vmax.f32 %v304_v57, 1e-05  ;;  %651 = vperm.xlu1 %872, %v625_v58  }
 0x1de   :  { %v798_v60 = vclamps-f32 %v370_v28, 127.0  ;;  %925 = vrcp.f32 %v319_v53  ;;  %v449_v39 = vmul.f32 %v1265_v59, %v319_v53  ;;  %v348_v63 = vmul.f32 127.0, %v916_v25 }
 0x1df   :  { %v852_v45 = vround.rtne.f32 %v791_v21  ;;  %v371_v62 = vmul.f32 %v355_v47, %v1191_v52  ;;  %v307_v3 = vpop.xlane.xlu1 %306  ;;  %v626_v4 = vld [vmem:[#allocation3 + $0x18] sm:$0xff]  ;;  %927 = vrcp.f32 %v326_v61  ;;  %v456_v6 = vmul.f32 %v1265_v59, %v326_v61 }
 0x1e0   :  { %v918_v5 = vpop.eup %917  ;;  %466 = vst.msk [vmem:[#allocation3 + $0x28] sm:$0xff] %vm460_vm1, %v449_v39  ;;  %v327_v7 = vmax.f32 %v307_v3, 1e-05  ;;  %v364_v12 = vmul.f32 %v348_v63, %v1196_v56  ;;  %v286_v13 = vpop.xlane.xlu0 %285  ;;  %v859_v0 = vround.rtne.f32 %v798_v60 }
 0x1e1   :  { %v426_v8 = vpack.c.bf16 %v852_v45, %v851_v41  ;;  %v799_v9 = vclamps-f32 %v371_v62, 127.0  ;;  %v349_v55 = vmul.f32 127.0, %v918_v5  ;;  %v920_v14 = vpop.eup %919  ;;  %473 = vst.msk [vmem:[#allocation3 + $0x60] sm:$0xff] %vm460_vm1, %v456_v6  ;;  %v320_v18 = vmax.f32 %v286_v13, 1e-05  ;;  %656 = vperm.xlu1 %872, %v626_v4  }
 0x1e2   :  { %929 = vrcp.f32 %v327_v7  ;;  %v457_v52 = vmul.f32 %v1265_v59, %v327_v7  ;;  %v792_v26 = vclamps-f32 %v364_v12, 127.0  ;;  %v356_v30 = vmul.f32 127.0, %v920_v14 }
 0x1e3   :  { %434 = vst.msk [vmem:[#allocation2] sm:$0xff] %vm40_vm0, %v426_v8  ;;  %v860_v16 = vround.rtne.f32 %v799_v9  ;;  %v365_v27 = vmul.f32 %v349_v55, %v1201_v2  ;;  %v289_v31 = vpop.xlane.xlu1 %288  ;;  %v634_v56 = vld [vmem:[#allocation3 + $0x58] sm:$0xff]  ;;  %931 = vrcp.f32 %v320_v18  ;;  %v450_v33 = vmul.f32 %v1265_v59, %v320_v18 }
 0x1e4   :  { %v922_v1 = vpop.eup %921  ;;  %474 = vst.msk [vmem:[#allocation3 + $0x68] sm:$0xff] %vm460_vm1, %v457_v52  ;;  %v321_v34 = vmax.f32 %v289_v31, 1e-05  ;;  %696 = vperm.xlu0 %871, %v634_v56   ;;  %v372_v36 = vmul.f32 %v356_v30, %v1204_v54  ;;  %v310_v40 = vpop.xlane.xlu0 %309  ;;  %v627_v11 = vld [vmem:[#allocation3 + $0x20] sm:$0xff]  ;;  %v853_v22 = vround.rtne.f32 %v792_v26 }
 0x1e5   :  { %v430_v20 = vpack.c.bf16 %v860_v16, %v859_v0  ;;  %v793_v38 = vclamps-f32 %v365_v27, 127.0  ;;  %v924_v23 = vpop.eup %923  ;;  %v357_v46 = vmul.f32 127.0, %v922_v1  ;;  %467 = vst.msk [vmem:[#allocation3 + $0x30] sm:$0xff] %vm460_vm1, %v450_v33  ;;  %v328_v24 = vmax.f32 %v310_v40, 1e-05  ;;  %661 = vperm.xlu1 %872, %v627_v11  }
 0x1e6   :  { %933 = vrcp.f32 %v321_v34  ;;  %v451_v2 = vmul.f32 %v1265_v59, %v321_v34  ;;  %v800_v49 = vclamps-f32 %v372_v36, 127.0  ;;  %v350_v17 = vmul.f32 127.0, %v924_v23  ;;  %v631_v36 = vld [vmem:[#allocation3 + $0x40] sm:$0xff] }
 0x1e7   :  { %438 = vst.msk [vmem:[#allocation2 + $0x20] sm:$0xff] %vm40_vm0, %v430_v20  ;;  %v854_v48 = vround.rtne.f32 %v793_v38  ;;  %v313_v35 = vpop.xlane.xlu1 %312  ;;  %v628_v44 = vld [vmem:[#allocation3 + $0x28] sm:$0xff]  ;;  %v373_v28 = vmul.f32 %v357_v46, %v1211_v15  ;;  %935 = vrcp.f32 %v328_v24  ;;  %v458_v37 = vmul.f32 %v1265_v59, %v328_v24 }
 0x1e8   :  { %v926_v54 = vpop.eup %925  ;;  %468 = vst.msk [vmem:[#allocation3 + $0x38] sm:$0xff] %vm460_vm1, %v451_v2  ;;  %v329_v53 = vmax.f32 %v313_v35, 1e-05  ;;  %v366_v47 = vmul.f32 %v350_v17, %v1215_v19  ;;  %v861_v62 = vround.rtne.f32 %v800_v49 }
 0x1e9   :  { %v427_v21 = vpack.c.bf16 %v854_v48, %v853_v22  ;;  %v351_v57 = vmul.f32 127.0, %v926_v54  ;;  %v928_v58 = vpop.eup %927  ;;  %v801_v25 = vclamps-f32 %v373_v28, 127.0  ;;  %475 = vst.msk [vmem:[#allocation3 + $0x70] sm:$0xff] %vm460_vm1, %v458_v37  ;;  %666 = vperm.xlu1 %872, %v628_v44   ;;  %v635_v44 = vld [vmem:[#allocation3 + $0x60] sm:$0xff] }
 0x1ea   :  { %937 = vrcp.f32 %v329_v53  ;;  %v459_v60 = vmul.f32 %v1265_v59, %v329_v53  ;;  %v477_v39 = vld [vmem:[#allocation2] sm:$0xff]  ;;  %v794_v15 = vclamps-f32 %v366_v47, 127.0  ;;  %v358_v41 = vmul.f32 127.0, %v928_v58 }
 0x1eb   :  { %435 = vst.msk [vmem:[#allocation2 + $0x8] sm:$0xff] %vm40_vm0, %v427_v21  ;;  %v367_v61 = vmul.f32 %v351_v57, %v1221_v32  ;;  %831 = vmatprep.mubr.msk.bf16.mxu0 %vm40_vm0, %v477_v39  ;;  %v636_v45 = vld [vmem:[#allocation3 + $0x68] sm:$0xff]  ;;  %v862_v63 = vround.rtne.f32 %v801_v25 }
 0x1ec   :  { %v930_v19 = vpop.eup %929  ;;  %476 = vst.msk [vmem:[#allocation3 + $0x78] sm:$0xff] %vm460_vm1, %v459_v60  ;;  %706 = vperm.xlu0 %871, %v636_v45   ;;  %v374_v59 = vmul.f32 %v358_v41, %v1225_v10  ;;  %v629_v5 = vld [vmem:[#allocation3 + $0x30] sm:$0xff]  ;;  %v855_v8 = vround.rtne.f32 %v794_v15  ;;  %v1334_v41 = vld [vmem:[%s1366_s2] ss:$0 sm:$0xff]  ;;  %s964_s2 = smov [#allocation5]  }
 0x1ed   :  { %v795_v3 = vclamps-f32 %v367_v61, 127.0  ;;  %v359_v4 = vmul.f32 127.0, %v930_v19  ;;  %v932_v6 = vpop.eup %931  ;;  %v431_v7 = vpack.c.bf16 %v862_v63, %v861_v62  ;;  %671 = vperm.xlu1 %872, %v629_v5   ;;  %s779_s26 = sshll.u32 %s964_s2, 4  ;;  %s780_s26 = int_to_ptr.vmem [resolvable:$true] %s779_s26 }
 0x1ee   :  { %v481_v32 = vld [vmem:[#allocation2 + $0x20] sm:$0xff]  ;;  %v802_v12 = vclamps-f32 %v374_v59, 127.0  ;;  %v352_v13 = vmul.f32 127.0, %v932_v6  ;;  %s939_s27 = scalar_lea.vmem %s780_s26, 2048  ;;  %p944_p1 = scmp.lt.s32.totalorder %s780_s26, %s780_s26 }
 0x1ef   :  { %v856_v9 = vround.rtne.f32 %v795_v3  ;;  %v375_v55 = vmul.f32 %v359_v4, %v1231_v42  ;;  %839 = vmatprep.mubr.msk.bf16.mxu1 %vm40_vm0, %v481_v32  ;;  %v630_v14 = vld [vmem:[#allocation3 + $0x38] sm:$0xff]  ;;  %439 = vst.msk [vmem:[#allocation2 + $0x28] sm:$0xff] %vm40_vm0, %v431_v7  ;;  %p940_p0 = scmp.ne.s32.totalorder %s780_s26, %s939_s27  ;;  %p945_p2 = scmp.lt.s32.totalorder %s939_s27, %s939_s27 }
 0x1f0   :  { %v934_v0 = vpop.eup %933  ;;  %v368_v18 = vmul.f32 %v352_v13, %v1235_v43  ;;  %v863_v30 = vround.rtne.f32 %v802_v12  ;;  %v637_v54 = vld [vmem:[#allocation3 + $0x70] sm:$0xff] }
 0x1f1   :  { %v428_v52 = vpack.c.bf16 %v856_v9, %v855_v8  ;;  %v803_v10 = vclamps-f32 %v375_v55, 127.0  ;;  %v936_v16 = vpop.eup %935  ;;  %v353_v26 = vmul.f32 127.0, %v934_v0  ;;  %676 = vperm.xlu1 %872, %v630_v14   ;;  %p946_p3 = por %p945_p2, %p944_p1 }
 0x1f2   :  { %v478_v27 = vld [vmem:[#allocation2 + $0x8] sm:$0xff]  ;;  %v360_v42 = vmul.f32 127.0, %v936_v16  ;;  %v796_v33 = vclamps-f32 %v368_v18, 127.0 }
 0x1f3   :  { %436 = vst.msk [vmem:[#allocation2 + $0x10] sm:$0xff] %vm40_vm0, %v428_v52  ;;  %v864_v31 = vround.rtne.f32 %v803_v10  ;;  %832 = vmatmul.mubr.msk.bf16.vlgmr.msra.gmra.mrb[0].mxu0 %vm40_vm0, %v478_v27  ;;  %v638_v56 = vld [vmem:[#allocation3 + $0x78] sm:$0xff]  ;;  %v369_v34 = vmul.f32 %v353_v26, %v1241_v50  ;;  %v633_v50 = vld [vmem:[#allocation3 + $0x50] sm:$0xff]  ;;  %p947_p4 = pnand %p946_p3, %p940_p0 }
 0x1f4   :  { %v938_v1 = vpop.eup %937  ;;  %716 = vperm.xlu0 %871, %v638_v56   ;;  %v376_v43 = vmul.f32 %v360_v42, %v1245_v51  ;;  %v857_v2 = vround.rtne.f32 %v796_v33 }
 0x1f5   :  { %v432_v20 = vpack.c.bf16 %v864_v31, %v863_v30  ;;  %v361_v38 = vmul.f32 127.0, %v938_v1  ;;  %v797_v40 = vclamps-f32 %v369_v34, 127.0  ;;  %681 = vperm.xlu1 %872, %v631_v36  }
 0x1f6   :  { %v804_v11 = vclamps-f32 %v376_v43, 127.0  ;;  %v482_v46 = vld [vmem:[#allocation2 + $0x28] sm:$0xff] }
 0x1f7   :  { %440 = vst.msk [vmem:[#allocation2 + $0x30] sm:$0xff] %vm40_vm0, %v432_v20  ;;  %v377_v23 = vmul.f32 %v361_v38, %v1251_v29  ;;  %v858_v24 = vround.rtne.f32 %v797_v40  ;;  %840 = vmatmul.mubr.msk.bf16.vlgmr.msra.gmra.mrb[0].mxu1 %vm40_vm0, %v482_v46 }
 0x1f8   :  { %v865_v51 = vround.rtne.f32 %v804_v11 }
 0x1f9   :  { %v805_v22 = vclamps-f32 %v377_v23, 127.0  ;;  %v429_v48 = vpack.c.bf16 %v858_v24, %v857_v2  ;;  %691 = vperm.xlu1 %872, %v633_v50  }
 0x1fa   :  { %v479_v49 = vld [vmem:[#allocation2 + $0x10] sm:$0xff] }
 0x1fb   :  { %v866_v17 = vround.rtne.f32 %v805_v22  ;;  %835 = vmatprep.mubr.msk.bf16.mxu0 %vm40_vm0, %v479_v49  ;;  %437 = vst.msk [vmem:[#allocation2 + $0x18] sm:$0xff] %vm40_vm0, %v429_v48 }
 0x1fd   :  { %v433_v35 = vpack.c.bf16 %v866_v17, %v865_v51  ;;  %701 = vperm.xlu1 %872, %v635_v44  }
 0x1fe   :  { %v483_v29 = vld [vmem:[#allocation2 + $0x30] sm:$0xff] }
 0x1ff   :  { %441 = vst.msk [vmem:[#allocation2 + $0x38] sm:$0xff] %vm40_vm0, %v433_v35  ;;  %843 = vmatprep.mubr.msk.bf16.mxu1 %vm40_vm0, %v483_v29 }
 0x201   :  { %711 = vperm.xlu1 %872, %v637_v54  }
 0x202   :  { %v480_v28 = vld [vmem:[#allocation2 + $0x18] sm:$0xff] }
 0x203   :  { %836 = vmatmul.mubr.msk.bf16.gmra.mrb[4].mxu0 %vm40_vm0, %v480_v28 }
 0x206   :  { %v484_v37 = vld [vmem:[#allocation2 + $0x38] sm:$0xff] }
 0x207   :  { %844 = vmatmul.mubr.msk.bf16.gmra.mrb[4].mxu1 %vm40_vm0, %v484_v37 }
 0x253   :  { %v642_v39 = vpop.permute.xlu0 %641 }
 0x257   :  { %v647_v53 = vpop.permute.xlu1 %646 }
 0x25b   :  { %v687_v3 = vpop.permute.xlu0 %686 }
 0x25c   :  { %v652_v21 = vpop.permute.xlu1 %651 }
 0x260   :  { %v657_v47 = vpop.permute.xlu1 %656 }
 0x263   :  { %v697_v14 = vpop.permute.xlu0 %696 }
 0x264   :  { %v662_v57 = vpop.permute.xlu1 %661 }
 0x268   :  { %v667_v58 = vpop.permute.xlu1 %666 }
 0x26b   :  { %v707_v1 = vpop.permute.xlu0 %706 }
 0x26c   :  { %v672_v25 = vpop.permute.xlu1 %671 }
 0x270   :  { %v677_v60 = vpop.permute.xlu1 %676 }
 0x273   :  { %v717_v50 = vpop.permute.xlu0 %716 }
 0x274   :  { %v682_v15 = vpop.permute.xlu1 %681 }
 0x278   :  { %v692_v8 = vpop.permute.xlu1 %691 }
 0x27c   :  { %v702_v42 = vpop.permute.xlu1 %701 }
 0x280   :  { %v712_v20 = vpop.permute.xlu1 %711 }
 0x2c6   :  { %v833_v61 = vpop.f32.mrb[0].mxu0 }
 0x2c7   :  { %v721_v45 = vmul.f32 %v833_v61, %v652_v21  ;;  %v560_v19 = vpop.f32.mrb[1].mxu0 }
 0x2c8   :  { %v719_v62 = vmul.f32 %v642_v39, %v560_v19  ;;  %v834_v63 = vpop.f32.mrb[2].mxu0 }
 0x2c9   :  { %v744_v59 = vadd.f32 %v1334_v41, %v721_v45  ;;  %v722_v4 = vmul.f32 %v834_v63, %v657_v47  ;;  %v563_v5 = vpop.f32.mrb[3].mxu0 }
 0x2ca   :  { %v742_v6 = vadd.f32 %v1334_v41, %v719_v62  ;;  %v720_v7 = vmul.f32 %v647_v53, %v563_v5  ;;  %v841_v9 = vpop.f32.mrb[0].mxu1 }
 0x2cb   :  { %760 = vst [vmem:[#allocation5 + $0x10] sm:$0xff] %v744_v59  ;;  %v745_v32 = vadd.f32 %v1334_v41, %v722_v4  ;;  %v729_v55 = vmul.f32 %v841_v9, %v692_v8  ;;  %v592_v13 = vpop.f32.mrb[1].mxu1 }
 0x2cc   :  { %758 = vst [vmem:[#allocation5] sm:$0xff] %v742_v6  ;;  %v743_v12 = vadd.f32 %v1334_v41, %v720_v7  ;;  %v727_v0 = vmul.f32 %v682_v15, %v592_v13  ;;  %v842_v52 = vpop.f32.mrb[2].mxu1 }
 0x2cd   :  { %761 = vst [vmem:[#allocation5 + $0x18] sm:$0xff] %v745_v32  ;;  %v752_v10 = vadd.f32 %v1334_v41, %v729_v55  ;;  %v730_v18 = vmul.f32 %v842_v52, %v697_v14  ;;  %v595_v16 = vpop.f32.mrb[3].mxu1 }
 0x2ce   :  { %759 = vst [vmem:[#allocation5 + $0x8] sm:$0xff] %v743_v12  ;;  %v750_v26 = vadd.f32 %v1334_v41, %v727_v0  ;;  %v728_v27 = vmul.f32 %v687_v3, %v595_v16 }
 0x2cf   :  { %768 = vst [vmem:[#allocation5 + $0x50] sm:$0xff] %v752_v10  ;;  %v753_v30 = vadd.f32 %v1334_v41, %v730_v18 }
 0x2d0   :  { %766 = vst [vmem:[#allocation5 + $0x40] sm:$0xff] %v750_v26  ;;  %v751_v31 = vadd.f32 %v1334_v41, %v728_v27 }
 0x2d1   :  { %769 = vst [vmem:[#allocation5 + $0x58] sm:$0xff] %v753_v30 }
 0x2d2   :  { %767 = vst [vmem:[#allocation5 + $0x48] sm:$0xff] %v751_v31 }
 0x2d6   :  { %v837_v56 = vpop.f32.mrb[4].mxu0 }
 0x2d7   :  { %v725_v33 = vmul.f32 %v837_v56, %v672_v25  ;;  %v576_v34 = vpop.f32.mrb[5].mxu0 }
 0x2d8   :  { %v723_v43 = vmul.f32 %v662_v57, %v576_v34  ;;  %v838_v38 = vpop.f32.mrb[6].mxu0 }
 0x2d9   :  { %v748_v36 = vadd.f32 %v1334_v41, %v725_v33  ;;  %v726_v40 = vmul.f32 %v838_v38, %v677_v60  ;;  %v579_v11 = vpop.f32.mrb[7].mxu0 }
 0x2da   :  { %v845_v23 = vpop.f32.mrb[4].mxu1  ;;  %v746_v46 = vadd.f32 %v1334_v41, %v723_v43  ;;  %v724_v2 = vmul.f32 %v667_v58, %v579_v11 }
 0x2db   :  { %v733_v24 = vmul.f32 %v845_v23, %v712_v20  ;;  %v608_v22 = vpop.f32.mrb[5].mxu1  ;;  %764 = vst [vmem:[#allocation5 + $0x30] sm:$0xff] %v748_v36  ;;  %v749_v48 = vadd.f32 %v1334_v41, %v726_v40 }
 0x2dc   :  { %v731_v49 = vmul.f32 %v702_v42, %v608_v22  ;;  %v846_v51 = vpop.f32.mrb[6].mxu1  ;;  %762 = vst [vmem:[#allocation5 + $0x20] sm:$0xff] %v746_v46  ;;  %v747_v17 = vadd.f32 %v1334_v41, %v724_v2 }
 0x2dd   :  { %v756_v35 = vadd.f32 %v1334_v41, %v733_v24  ;;  %v734_v44 = vmul.f32 %v846_v51, %v717_v50  ;;  %v611_v29 = vpop.f32.mrb[7].mxu1  ;;  %765 = vst [vmem:[#allocation5 + $0x38] sm:$0xff] %v749_v48 }
 0x2de   :  { %v754_v54 = vadd.f32 %v1334_v41, %v731_v49  ;;  %v732_v28 = vmul.f32 %v707_v1, %v611_v29  ;;  %763 = vst [vmem:[#allocation5 + $0x28] sm:$0xff] %v747_v17 }
 0x2df   :  { %772 = vst [vmem:[#allocation5 + $0x70] sm:$0xff] %v756_v35  ;;  %v757_v37 = vadd.f32 %v1334_v41, %v734_v44 }
 0x2e0   :  { %770 = vst [vmem:[#allocation5 + $0x60] sm:$0xff] %v754_v54  ;;  %v755_v53 = vadd.f32 %v1334_v41, %v732_v28 }
 0x2e1   :  { %773 = vst [vmem:[#allocation5 + $0x78] sm:$0xff] %v757_v37 }
 0x2e2   :  { %771 = vst [vmem:[#allocation5 + $0x68] sm:$0xff] %v755_v53 }
 0x2e3   :  { %950 = shalt.err (!%p947_p4)
}
 0x2e4   :  { %s951_s30 = scalar_lea.hbm %s1368_s4, 2048 }
 0x2e5   :  { %p952_p5 = scmp.ne.s32.totalorder %s1368_s4, %s951_s30  ;;  %p955_p6 = scmp.lt.u32.totalorder %s951_s30, %s1368_s4 }
 0x2e7   :  { %p957_p7 = pnand %p955_p6, %p952_p5 }
 0x2e9   :  { %960 = shalt.err (!%p957_p7)
}
 0x2ea   :  { %s965_s9 = smov 128   ;;  %s966_s10 = smov 8  }
 0x2eb   :  { %785 = dma.vmem_to_hbm [thread:$0]  %s780_s26, 2048, %s1368_s4, [#allocation6], %s965_s9, %s965_s9, %s966_s10  }
 0x2ec   :  { %961 = dma.done.wait [#allocation6], 2048  }
 0x2ed   :  { %962 = vsyncadd [#allocation6], 4294965248 }
 0x2ee   :  { %789 = vsyncpa [#allocation6], 1 }

</bundles_post_ra>
